<compile_context>
chip_gen: v7x
topology: tpu7x:2x2x1
jax: 0.10.0
libtpu: 0.0.40
codegen_flags: <defaults>
</compile_context>

<pallas_src>
import jax
import jax.numpy as jnp
from jax.experimental import pallas as pl
from jax.experimental.pallas import tpu as pltpu


_VMEM_LIMIT_BYTES = 32 * 1024 * 1024   # safe scoped-VMEM limit on v5e/v6e/v7x
_DEF_TILE_BYTES = 4 * 1024 * 1024      # per-block budget; 3 arrays x 2 bufs ~ 24 MiB


def _add_pe_kernel(x_ref, pe_ref, o_ref):
    # Pure VPU elementwise add. When the PE block has a leading 1 (flattened
    # (1, S*D) case), jnp broadcasting replicates it over the batch rows.
    o_ref[...] = (x_ref[...] + pe_ref[...]).astype(o_ref.dtype)


def _sublane_multiple(dtype):
    # f32 -> 8, bf16/f16 -> 16, int8/fp8 -> 32 (sub-32-bit dtypes pack sublanes)
    itemsize = jnp.dtype(dtype).itemsize
    return 8 * max(1, 4 // itemsize)


def _compiler_params(dim_semantics):
    return pltpu.CompilerParams(
        dimension_semantics=dim_semantics,
        vmem_limit_bytes=_VMEM_LIMIT_BYTES,
    )


def _cost_estimate(B, S, D, itemsize, pe_bytes):
    # read x + write out + PE (read once when resident).
    return pl.CostEstimate(
        flops=B * S * D,
        transcendentals=0,
        bytes_accessed=2 * B * S * D * itemsize + pe_bytes,
    )


def learnable_positional_encoding(x, pe, *, max_tile_bytes=_DEF_TILE_BYTES):
    """x: (B, S, D); pe: (1, max_len, D).  Returns x + pe[:, :S]."""
    B, S, D = x.shape
    _, max_len, d_pe = pe.shape
    if d_pe != D:
        raise ValueError(f"pe d_model {d_pe} != x d_model {D}")
    if S > max_len:
        # PyTorch would fail to broadcast; dynamic_slice would silently clamp.
        raise ValueError(f"sequence length {S} exceeds max_len {max_len}")

    itemsize = jnp.dtype(x.dtype).itemsize
    sub = _sublane_multiple(x.dtype)

    # ---- Case A: D is lane-dense -> tile rows of (B*S, D) -------------------
    if D % 128 == 0 and S % sub == 0:
        rows_budget = max(1, max_tile_bytes // (D * itemsize))
        tr = 0
        for d in range(1, S + 1):
            if S % d == 0 and d % sub == 0 and d <= rows_budget:
                tr = d  # largest divisor of S that fits the budget
        if tr > 0:
            n_seq_blocks = S // tr
            x2 = x.reshape(B * S, D)
            pe2 = pe.reshape(max_len, D)   # free reshape; sliced via index_map
            # Grid: seq-block axis outer, batch axis INNERMOST.  The PE block
            # index depends only on the outer axis, so it is unchanged between
            # consecutive steps -> no per-step re-DMA of the PE tile.
            out2 = pl.pallas_call(
                _add_pe_kernel,
                out_shape=jax.ShapeDtypeStruct((B * S, D), x.dtype),
                grid_spec=pltpu.PrefetchScalarGridSpec(
                    num_scalar_prefetch=0,
                    grid=(n_seq_blocks, B),
                    in_specs=[
                        pl.BlockSpec((tr, D), lambda k, b: (b * n_seq_blocks + k, 0)),
                        pl.BlockSpec((tr, D), lambda k, b: (k, 0)),
                    ],
                    out_specs=pl.BlockSpec(
                        (tr, D), lambda k, b: (b * n_seq_blocks + k, 0)),
                ),
                compiler_params=_compiler_params(("parallel", "parallel")),
                input_output_aliases={0: 0},
                cost_estimate=_cost_estimate(B, S, D, itemsize, S * D * itemsize),
            )(x2, pe2)
            return out2.reshape(B, S, D)

    # ---- Case B: D < 128 (demo: D=32) -> flatten (S, D) onto the lane axis --
    if (S * D) % 128 == 0:
        row_bytes = S * D * itemsize
        tb = 0
        if B * row_bytes <= max_tile_bytes:
            tb = B                                  # full-extent batch block
        else:
            for d in range(1, B + 1):
                if B % d == 0 and d % sub == 0 and d * row_bytes <= max_tile_bytes:
                    tb = d
        if tb > 0:
            x2 = x.reshape(B, S * D)
            pe2 = pe.reshape(1, max_len * D)        # block index 0 == pe[:, :S]
            out2 = pl.pallas_call(
                _add_pe_kernel,
                out_shape=jax.ShapeDtypeStruct((B, S * D), x.dtype),
                grid_spec=pltpu.PrefetchScalarGridSpec(
                    num_scalar_prefetch=0,
                    grid=(B // tb,),
                    in_specs=[
                        pl.BlockSpec((tb, S * D), lambda i: (i, 0)),
                        # constant block index -> PE stays resident in VMEM
                        pl.BlockSpec((1, S * D), lambda i: (0, 0)),
                    ],
                    out_specs=pl.BlockSpec((tb, S * D), lambda i: (i, 0)),
                ),
                compiler_params=_compiler_params(("parallel",)),
                input_output_aliases={0: 0},
                cost_estimate=_cost_estimate(B, S, D, itemsize, S * D * itemsize),
            )(x2, pe2)
            return out2.reshape(B, S, D)

    # ---- Fallback: (1, ts, D) blocks with inner seq tiling -------------------
    # TODO(synk): when D < 128 this path emits masked partial stores; in a real
    # model route such shapes through a lane-dense reshape or fuse into the
    # neighboring kernel instead.
    candidates = [d for d in range(1, S + 1)
                  if S % d == 0 and d % sub == 0 and d * D * itemsize <= max_tile_bytes]
    ts = max(candidates) if candidates else S       # full extent is always legal
    n_s = S // ts
    # Pass PE unsliced (sliced purely via index_map) whenever the block layout
    # rules allow; only slice (extra HBM pass over the small table) otherwise.
    if ts % sub == 0 or S == max_len:
        pe_arg = pe
    else:
        pe_arg = pe[:, :S, :]
    out = pl.pallas_call(
        _add_pe_kernel,
        out_shape=jax.ShapeDtypeStruct((B, S, D), x.dtype),
        grid_spec=pltpu.PrefetchScalarGridSpec(
            num_scalar_prefetch=0,
            grid=(n_s, B),                           # batch innermost -> PE resident
            in_specs=[
                pl.BlockSpec((1, ts, D), lambda s, b: (b, s, 0)),
                pl.BlockSpec((1, ts, D), lambda s, b: (0, s, 0)),
            ],
            out_specs=pl.BlockSpec((1, ts, D), lambda s, b: (b, s, 0)),
        ),
        compiler_params=_compiler_params(("parallel", "parallel")),
        input_output_aliases={0: 0},
        cost_estimate=_cost_estimate(B, S, D, itemsize, S * D * itemsize),
    )(x, pe_arg)
    return out


if __name__ == "__main__":
    def make_inputs(key, B, S, D, max_len):
        kx, kpe = jax.random.split(key)
        x = jax.random.normal(kx, (B, S, D), dtype=jnp.float32)
        # "learnable" parameter, matching torch.randn(1, max_len, d_model) * 0.01
        pe = jax.random.normal(kpe, (1, max_len, D), dtype=jnp.float32) * 0.01
        return x, pe

    # Primary demo shape (batch=2, seq=8, d_model=32): D<128 -> lane-dense
    # flatten of (S, D) onto lanes (case B).
    B, S, D, MAX_LEN = 2, 8, 32, 500
    x, pe = make_inputs(jax.random.PRNGKey(0), B, S, D, MAX_LEN)
    ref = x + pe[:, :S]
    out = jax.block_until_ready(learnable_positional_encoding(x, pe))
    assert out.shape == (B, S, D)
    assert jnp.allclose(out, ref, atol=1e-6), "mismatch vs reference (case B)"

    # Case A: D multiple of 128 -> flattened (B*S, D) row tiles, 2-D grid.
    xa, pea = make_inputs(jax.random.PRNGKey(1), 2, 16, 128, 64)
    ref_a = xa + pea[:, :16]
    outa = jax.block_until_ready(learnable_positional_encoding(xa, pea))
    assert jnp.allclose(outa, ref_a, atol=1e-6), "mismatch (case A)"

    # Case A with a tiny forced tile so n_seq_blocks > 1 (exercises the
    # seq-outer / batch-inner grid with the PE tile resident per seq block).
    outa2 = jax.block_until_ready(
        learnable_positional_encoding(xa, pea, max_tile_bytes=8 * 128 * 4))
    assert jnp.allclose(outa2, ref_a, atol=1e-6), "mismatch (case A, multi-block)"

    # Fallback path: neither D nor S*D is a multiple of 128 (PE passed unsliced).
    xf, pef = make_inputs(jax.random.PRNGKey(2), 2, 8, 24, 64)
    ref_f = xf + pef[:, :8]
    outf = jax.block_until_ready(learnable_positional_encoding(xf, pef))
    assert jnp.allclose(outf, ref_f, atol=1e-6), "mismatch (fallback)"

    print("KERNEL_OK")
</pallas_src>

<mosaic_0001>
module attributes {stable_mosaic.version = 11 : i64} {
  func.func @_add_pe_kernel(%arg0: i32, %arg1: memref<2x256xf32, #tpu.memory_space<vmem>>, %arg2: memref<1x256xf32, #tpu.memory_space<vmem>>, %arg3: memref<2x256xf32, #tpu.memory_space<vmem>>) attributes {dimension_semantics = [#tpu.dimension_semantics<parallel>], iteration_bounds = array<i64: 1>, scalar_prefetch = 0 : i64, scratch_operands = 0 : i64, tpu.core_type = #tpu.core_type<tc>, window_params = [{transform_indices = @transform_0, window_bounds = array<i64: 2, 256>}, {transform_indices = @transform_1, window_bounds = array<i64: 1, 256>}, {transform_indices = @transform_2, window_bounds = array<i64: 2, 256>}]} {
    %c0 = arith.constant 0 : index
    %c0_0 = arith.constant 0 : index
    %0 = vector.load %arg1[%c0, %c0_0] : memref<2x256xf32, #tpu.memory_space<vmem>>, vector<2x256xf32>
    %c0_1 = arith.constant 0 : index
    %c0_2 = arith.constant 0 : index
    %1 = vector.load %arg2[%c0_1, %c0_2] : memref<1x256xf32, #tpu.memory_space<vmem>>, vector<1x256xf32>
    %2 = vector.broadcast %1 : vector<1x256xf32> to vector<2x256xf32>
    %3 = arith.addf %0, %2 : vector<2x256xf32>
    %c0_3 = arith.constant 0 : index
    %c0_4 = arith.constant 0 : index
    %4 = vector.load %arg3[%c0_3, %c0_4] : memref<2x256xf32, #tpu.memory_space<vmem>>, vector<2x256xf32>
    tpu.vector_store %arg3[%c0_3, %c0_4], %3 {strides = array<i32>} : memref<2x256xf32, #tpu.memory_space<vmem>>, vector<2x256xf32>,
    return
  }
  func.func @transform_0(%arg0: i32) -> (i32, i32) {
    %c0_i32 = arith.constant 0 : i32
    %c0_i32_0 = arith.constant 0 : i32
    return %arg0, %c0_i32 : i32, i32
  }
  func.func @transform_1(%arg0: i32) -> (i32, i32) {
    %c0_i32 = arith.constant 0 : i32
    %c0_i32_0 = arith.constant 0 : i32
    %c0_i32_1 = arith.constant 0 : i32
    return %c0_i32, %c0_i32_0 : i32, i32
  }
  func.func @transform_2(%arg0: i32) -> (i32, i32) {
    %c0_i32 = arith.constant 0 : i32
    %c0_i32_0 = arith.constant 0 : i32
    return %arg0, %c0_i32 : i32, i32
  }
}

</mosaic_0001>

<bundles_post_ra>
// kernel: tpu_custom_call.1
= control target key start
LH: loop header
LB: loop body
LE: loop exit
PB: predicated region body
PF: predicated region fallthrough
CT: control target
= control target key end

     0   :  { %7 = vsyncpa [#allocation3], 0  ;;  %s215_s0 = inlined_call_operand.hbm [shape: f32[2,256], index: 0, kind: input, shape index: {}, may-alias: {0,2}]   ;;  %s216_s1 = inlined_call_operand.hbm [shape: f32[1,16000], index: 1, kind: input, shape index: {}]   ;;  %s217_s2 = inlined_call_operand.hbm [shape: f32[2,256], index: 2, kind: output, shape index: {}, may-alias: {0,2}]  }
   0x1   :  { %8 = vsyncpa [#allocation6], 0 }
   0x2   :  { %9 = vsyncpa [#allocation4], 0  ;;  %s150_s9 = smov [#allocation2]   ;;  %s151_s11 = smov [#allocation5]  }
   0x3   :  { %s16_s10 = sshll.u32 %s150_s9, 4  ;;  %s26_s12 = sshll.u32 %s151_s11, 4  ;;  %s17_s10 = int_to_ptr.vmem [resolvable:$true] %s16_s10  ;;  %s169_s12 = int_to_ptr.vmem [resolvable:$true] %s26_s12 }
   0x4   :  { %s78_s15 = scalar_lea.hbm %s215_s0, 64 }
   0x5   :  { %p79_p0 = scmp.ne.s32.totalorder %s215_s0, %s78_s15  ;;  %p82_p1 = scmp.lt.u32.totalorder %s78_s15, %s215_s0 }
   0x7   :  { %p84_p2 = pnand %p82_p1, %p79_p0 }
   0x9   :  { %87 = shalt.err (!%p84_p2)
}
   0xa   :  { %s88_s20 = scalar_lea.vmem %s17_s10, 64  ;;  %p93_p4 = scmp.lt.s32.totalorder %s17_s10, %s17_s10 }
   0xb   :  { %p89_p3 = scmp.ne.s32.totalorder %s17_s10, %s88_s20  ;;  %p94_p5 = scmp.lt.s32.totalorder %s88_s20, %s88_s20 }
   0xd   :  { %p95_p6 = por %p94_p5, %p93_p4 }
   0xf   :  { %p96_p7 = pnand %p95_p6, %p89_p3 }
  0x11   :  { %99 = shalt.err (!%p96_p7)
}
  0x12   :  { %19 = dma.hbm_to_vmem [thread:$0]  %s215_s0, 64, %s17_s10, [#allocation3]  }
  0x13   :  { %s100_s25 = scalar_lea.hbm %s216_s1, 32  ;;  %s102_s30 = scalar_lea.hbm %s216_s1, 2000 }
  0x14   :  { %p101_p8 = scmp.ne.s32.totalorder %s216_s1, %s100_s25  ;;  %p103_p9 = scmp.lt.u32.totalorder %s102_s30, %s100_s25 }
  0x15   :  { %p104_p10 = scmp.lt.u32.totalorder %s100_s25, %s216_s1 }
  0x17   :  { %p105_p11 = por %p104_p10, %p103_p9 }
  0x19   :  { %p106_p12 = pnand %p105_p11, %p101_p8 }
  0x1b   :  { %109 = shalt.err (!%p106_p12)
}
  0x1c   :  { %s110_s0 = scalar_lea.vmem %s169_s12, 32  ;;  %p115_p0 = scmp.lt.s32.totalorder %s169_s12, %s169_s12 }
  0x1d   :  { %p111_p13 = scmp.ne.s32.totalorder %s169_s12, %s110_s0  ;;  %p116_p1 = scmp.lt.s32.totalorder %s110_s0, %s110_s0 }
  0x1f   :  { %p117_p2 = por %p116_p1, %p115_p0 }
  0x21   :  { %p118_p3 = pnand %p117_p2, %p111_p13 }
  0x23   :  { %121 = shalt.err (!%p118_p3)
}
  0x24   :  { %29 = dma.hbm_to_vmem [thread:$0]  %s216_s1, 32, %s169_s12, [#allocation6]  }
  0x25   :  { %144 = dma.done.wait [#allocation3], 64  }
  0x26   :  { %145 = vsyncadd [#allocation3], 4294967232 }
  0x27   :  { %146 = dma.done.wait [#allocation6], 32  }
  0x28   :  { %147 = vsyncadd [#allocation6], 4294967264  ;;  %v39_v0 = vlaneseq  ;;  %v152_v1 = vmov 1983009808   ;;  %v37_v7 = vld [vmem:[#allocation5] sm:$0x3] }
  0x29   :  { %v49_v2 = vunpack.c.l.s4 %v152_v1  ;;  %v36_v12 = vld [vmem:[#allocation2] sm:$0xf]  ;;  %s153_s7 = smov [#allocation7]  }
  0x2a   :  { %v40_v3 = vshrl.u32 %v39_v0, 7  ;;  %s64_s8 = sshll.u32 %s153_s7, 4  ;;  %s65_s8 = int_to_ptr.vmem [resolvable:$true] %s64_s8 }
  0x2b   :  { %v50_v6 = vunpack.c.0.s8 %v49_v2  ;;  %s122_s1 = scalar_lea.vmem %s65_s8, 64  ;;  %p127_p5 = scmp.lt.s32.totalorder %s65_s8, %s65_s8 }
  0x2c   :  { %v41_v4 = vsub.s32 0, %v40_v3  ;;  %v45_v5 = vsub.s32 1, %v40_v3  ;;  %p123_p4 = scmp.ne.s32.totalorder %s65_s8, %s122_s1  ;;  %p128_p6 = scmp.lt.s32.totalorder %s122_s1, %s122_s1 }
  0x2d   :  { %v53_v10 = vsub.s32 %v50_v6, %v40_v3 }
  0x2e   :  { %v42_v8 = vrot.slane %v37_v7, %v41_v4  ;;  %v46_v9 = vrot.slane %v37_v7, %v45_v5  ;;  %p129_p7 = por %p128_p6, %p127_p5 }
  0x30   :  { %v47_v11 = vcombine.low %v42_v8, %v46_v9  ;;  %p130_p8 = pnand %p129_p7, %p123_p4 }
  0x32   :  { %v54_v13 = vrot.slane %v47_v11, %v53_v10 }
  0x34   :  { %v56_v14 = vadd.f32 %v54_v13, %v36_v12 }
  0x36   :  { %57 = vst [vmem:[#allocation7] sm:$0xf] %v56_v14 }
  0x37   :  { %133 = shalt.err (!%p130_p8)
}
  0x38   :  { %s134_s11 = scalar_lea.hbm %s217_s2, 64 }
  0x39   :  { %p135_p9 = scmp.ne.s32.totalorder %s217_s2, %s134_s11  ;;  %p138_p10 = scmp.lt.u32.totalorder %s134_s11, %s217_s2 }
  0x3b   :  { %p140_p11 = pnand %p138_p10, %p135_p9 }
  0x3d   :  { %143 = shalt.err (!%p140_p11)
}
  0x3e   :  { %67 = dma.vmem_to_hbm [thread:$0]  %s65_s8, 64, %s217_s2, [#allocation4]  }
  0x3f   :  { %148 = dma.done.wait [#allocation4], 64  }
  0x40   :  { %149 = vsyncadd [#allocation4], 4294967232 }
  0x41   :  { %71 = vsyncpa [#allocation3], 1 }
  0x42   :  { %72 = vsyncpa [#allocation6], 1 }
  0x43   :  { %73 = vsyncpa [#allocation4], 1 }

</bundles_post_ra>
